<compile_context>
chip_gen: v6e
topology: v6e:2x2x1
jax: 0.10.0
libtpu: 0.0.40
codegen_flags: <defaults>
</compile_context>

<pallas_src>
import functools

import jax
import jax.numpy as jnp
from jax.experimental import pallas as pl
from jax.experimental.pallas import tpu as pltpu

_MiB = 1024 * 1024


def _round_up(x, m):
    return (x + m - 1) // m * m


def _encoder_kernel(x_ref, v_ref, b_ref, o_ref, *, no_imgnorm):
    # x_ref: (TM, D)  f32 tile of flattened image features (partial last tile ok)
    # v_ref: (D, Ep)  bf16 V^T, already scaled by g / ||V||_F (resident, 1 buffer)
    # b_ref: (1, Ep)  f32 bias (resident, 1 buffer)
    x = x_ref[...].astype(jnp.bfloat16)                       # in-register cast
    feats = jnp.dot(x, v_ref[...], preferred_element_type=jnp.float32)
    feats = feats + b_ref[...]

    if not no_imgnorm:
        # l2norm along last dim; eps added to the norm, matching vse.py.
        norm = jnp.sqrt(jnp.sum(feats * feats, axis=-1, keepdims=True)) + 1e-8
        feats = feats / norm

    o_ref[...] = feats.astype(o_ref.dtype)


def _vmem_budget_bytes():
    """Generation-aware VMEM budget: ~70% of physical, conservative fallback."""
    try:
        cap = int(pltpu.get_tpu_info().vmem_capacity_bytes)
    except Exception:
        cap = 64 * _MiB  # conservative: v7x per-TensorCore VMEM
    return cap, int(cap * 0.70)


def _pick_row_tile(n_rows, d, e_pad, out_bytes, budget_bytes):
    """Largest MXU-friendly row tile whose planned footprint fits the budget.

    Footprint model: single-buffered bf16 V^T + f32 bias (resident) plus
    double-buffered f32 x tiles and double-buffered out tiles.
    """
    resident = d * e_pad * 2 + e_pad * 4
    tm = None
    for cand in (1024, 768, 512, 256, 128, 64, 32, 16):
        if cand > n_rows:
            continue
        need = resident + 2 * cand * d * 4 + 2 * cand * e_pad * out_bytes
        if need <= budget_bytes:
            tm = cand
            break
    if tm is None:
        # Tiny N (< 16 rows) -> full-extent row block; or resident V alone
        # exceeds the budget -> fall back to the smallest tile.
        # TODO(synk): for very large img_dim * embed_size (resident V > VMEM
        # budget), add a trailing "arbitrary" K-reduction grid axis with an
        # f32 VMEM accumulator instead of keeping V fully resident.
        tm = min(n_rows, 16)

    # Megacore balance (v7x): cap tm so the single "parallel" axis yields
    # >= ~8 reasonably balanced steps; keep tm a multiple of 256 for the MXU.
    if tm > 256:
        cap = _round_up(pl.cdiv(n_rows, 8), 256)
        tm = max(256, min(tm, cap))

    planned = resident + 2 * tm * d * 4 + 2 * tm * e_pad * out_bytes
    return tm, planned


def encoder_image_weight_norm_precomp(images, v, g, b, *, no_imgnorm=False,
                                      out_dtype=jnp.float32):
    """Forward pass of EncoderImageWeightNormPrecomp.

    images: (batch, n_regions, img_dim)
    v:      (embed_size, img_dim)  raw weight_norm direction tensor (Linear layout)
    g:      () scalar gain
    b:      (embed_size,) bias
    returns (batch, n_regions, embed_size) in out_dtype
    """
    batch, n_regions, img_dim = images.shape
    embed_size = v.shape[0]
    N = batch * n_regions

    # weight_norm(dim=None): scalar s = g / ||V||_F, folded into V^T in f32
    # before the bf16 cast (the wrapper already touches V to transpose/pad,
    # and V is much smaller than the activations).
    v32 = v.astype(jnp.float32)
    g32 = jnp.asarray(g, jnp.float32)
    s = g32 / jnp.sqrt(jnp.sum(v32 * v32))

    # Embed dim padded to a lane multiple so the row l2norm sees whole rows
    # and output stores are lane-dense. Padded columns carry zero weight and
    # zero bias, so they contribute nothing to the row norm. The contraction
    # dim is NOT padded: the kernel uses a full-extent block for it.
    e_pad = _round_up(embed_size, 128)

    v_t = jnp.transpose(v32 * s)                                     # (D, E)
    v_t = jnp.pad(v_t, ((0, 0), (0, e_pad - embed_size)))
    v_t = v_t.astype(jnp.bfloat16)                                   # (D, Ep)

    b2d = jnp.pad(b.astype(jnp.float32).reshape(1, embed_size),
                  ((0, 0), (0, e_pad - embed_size)))                 # (1, Ep)

    x2d = images.reshape(N, img_dim).astype(jnp.float32)             # (N, D)

    out_bytes = jnp.dtype(out_dtype).itemsize
    vmem_cap, budget = _vmem_budget_bytes()
    tm, planned = _pick_row_tile(N, img_dim, e_pad, out_bytes, budget)
    vmem_limit = int(min(vmem_cap * 0.9, max(planned + 4 * _MiB, 16 * _MiB)))

    kernel = functools.partial(_encoder_kernel, no_imgnorm=no_imgnorm)

    out = pl.pallas_call(
        kernel,
        out_shape=jax.ShapeDtypeStruct((N, e_pad), out_dtype),
        grid=(pl.cdiv(N, tm),),
        in_specs=[
            # x: f32 tiles, default double-buffered pipeline.
            pl.BlockSpec((tm, img_dim), lambda i: (i, 0)),
            # V^T: constant block index -> resident, single buffer.
            pl.BlockSpec((img_dim, e_pad), lambda i: (0, 0),
                         pipeline_mode=pl.Buffered(1)),
            # bias: resident, single buffer.
            pl.BlockSpec((1, e_pad), lambda i: (0, 0),
                         pipeline_mode=pl.Buffered(1)),
        ],
        out_specs=pl.BlockSpec((tm, e_pad), lambda i: (i, 0)),
        compiler_params=pltpu.CompilerParams(
            dimension_semantics=("parallel",),
            vmem_limit_bytes=vmem_limit,
        ),
    )(x2d, v_t, b2d)

    out = out[:, :embed_size]
    return out.reshape(batch, n_regions, embed_size)


def _reference(images, v, g, b, *, no_imgnorm=False):
    """Pure-JAX f32 reference matching the PyTorch module."""
    w = g * v / jnp.sqrt(jnp.sum(v * v))               # weight_norm, dim=None
    feats = jnp.einsum("bnd,ed->bne", images, w) + b   # Linear
    if not no_imgnorm:
        norm = jnp.sqrt(jnp.sum(feats * feats, axis=-1, keepdims=True)) + 1e-8
        feats = feats / norm
    return feats


if __name__ == "__main__":
    # Small, deterministic shapes: batch=2, n_regions=8, img_dim=32, embed=32.
    batch, n_regions, img_dim, embed_size = 2, 8, 32, 32

    key = jax.random.PRNGKey(0)
    k_img, k_v, k_b = jax.random.split(key, 3)

    images = jax.random.normal(k_img, (batch, n_regions, img_dim), jnp.float32)

    # Deterministic parameter init (mirrors nn.Linear + weight_norm(dim=None)):
    bound = 1.0 / (img_dim ** 0.5)
    v = jax.random.uniform(
        k_v, (embed_size, img_dim), jnp.float32, minval=-bound, maxval=bound
    )
    b = jax.random.uniform(
        k_b, (embed_size,), jnp.float32, minval=-bound, maxval=bound
    )
    # weight_norm initializes g = ||v||_F so the initial effective weight == v.
    g = jnp.sqrt(jnp.sum(v * v))

    out = encoder_image_weight_norm_precomp(images, v, g, b, no_imgnorm=False)
    out = jax.block_until_ready(out)

    ref = _reference(images, v, g, b, no_imgnorm=False)
    assert out.shape == (batch, n_regions, embed_size)
    assert bool(jnp.all(jnp.isfinite(out)))
    # bf16 MXU inputs => relaxed tolerance vs the f32 reference.
    assert float(jnp.max(jnp.abs(out - ref))) < 3e-2

    print("KERNEL_OK")
</pallas_src>

<mosaic_0001>
module attributes {stable_mosaic.version = 11 : i64} {
  func.func @_encoder_kernel(%arg0: i32, %arg1: memref<16x32xf32, #tpu.memory_space<vmem>>, %arg2: memref<32x128xbf16, #tpu.memory_space<vmem>>, %arg3: memref<1x128xf32, #tpu.memory_space<vmem>>, %arg4: memref<16x128xf32, #tpu.memory_space<vmem>>) attributes {dimension_semantics = [#tpu.dimension_semantics<parallel>], iteration_bounds = array<i64: 1>, scalar_prefetch = 0 : i64, scratch_operands = 0 : i64, tpu.core_type = #tpu.core_type<tc>, window_params = [{transform_indices = @transform_0, window_bounds = array<i64: 16, 32>}, {pipeline_mode = #tpu.pipeline_mode<synchronous>, transform_indices = @transform_1, window_bounds = array<i64: 32, 128>}, {pipeline_mode = #tpu.pipeline_mode<synchronous>, transform_indices = @transform_2, window_bounds = array<i64: 1, 128>}, {transform_indices = @transform_3, window_bounds = array<i64: 16, 128>}]} {
    %c0 = arith.constant 0 : index
    %c0_0 = arith.constant 0 : index
    %0 = vector.load %arg1[%c0, %c0_0] : memref<16x32xf32, #tpu.memory_space<vmem>>, vector<16x32xf32>
    %1 = arith.truncf %0 : vector<16x32xf32> to vector<16x32xbf16>
    %c0_1 = arith.constant 0 : index
    %c0_2 = arith.constant 0 : index
    %2 = vector.load %arg2[%c0_1, %c0_2] : memref<32x128xbf16, #tpu.memory_space<vmem>>, vector<32x128xbf16>
    %cst = arith.constant dense<0.000000e+00> : vector<16x128xf32>
    %3 = tpu.matmul %1, %2, %cst {dimension_numbers = #tpu.dot_dimension_numbers<[1], [0], [0], [1], [0, 0, 1, 1], [], []>} : vector<16x32xbf16>, vector<32x128xbf16>, vector<16x128xf32> -> vector<16x128xf32>
    %c0_3 = arith.constant 0 : index
    %c0_4 = arith.constant 0 : index
    %4 = vector.load %arg3[%c0_3, %c0_4] : memref<1x128xf32, #tpu.memory_space<vmem>>, vector<1x128xf32>
    %5 = vector.broadcast %4 : vector<1x128xf32> to vector<16x128xf32>
    %6 = arith.addf %3, %5 : vector<16x128xf32>
    %7 = arith.mulf %6, %6 : vector<16x128xf32>
    %cst_5 = arith.constant dense<0.000000e+00> : vector<16xf32>
    %8 = vector.multi_reduction <add>, %7, %cst_5 [1] : vector<16x128xf32> to vector<16xf32>
    %9 = vector.shape_cast %8 : vector<16xf32> to vector<16x1xf32>
    %10 = math.sqrt %9 : vector<16x1xf32>
    %cst_6 = arith.constant 9.99999993E-9 : f32
    %11 = vector.broadcast %cst_6 : f32 to vector<16x1xf32>
    %12 = arith.addf %10, %11 : vector<16x1xf32>
    %13 = vector.broadcast %12 : vector<16x1xf32> to vector<16x128xf32>
    %14 = arith.divf %6, %13 : vector<16x128xf32>
    %c0_7 = arith.constant 0 : index
    %c0_8 = arith.constant 0 : index
    %15 = vector.load %arg4[%c0_7, %c0_8] : memref<16x128xf32, #tpu.memory_space<vmem>>, vector<16x128xf32>
    tpu.vector_store %arg4[%c0_7, %c0_8], %14 {strides = array<i32>} : memref<16x128xf32, #tpu.memory_space<vmem>>, vector<16x128xf32>,
    return
  }
  func.func @transform_0(%arg0: i32) -> (i32, i32) {
    %c0_i32 = arith.constant 0 : i32
    %c0_i32_0 = arith.constant 0 : i32
    return %arg0, %c0_i32 : i32, i32
  }
  func.func @transform_1(%arg0: i32) -> (i32, i32) {
    %c0_i32 = arith.constant 0 : i32
    %c0_i32_0 = arith.constant 0 : i32
    %c0_i32_1 = arith.constant 0 : i32
    return %c0_i32, %c0_i32_0 : i32, i32
  }
  func.func @transform_2(%arg0: i32) -> (i32, i32) {
    %c0_i32 = arith.constant 0 : i32
    %c0_i32_0 = arith.constant 0 : i32
    %c0_i32_1 = arith.constant 0 : i32
    return %c0_i32, %c0_i32_0 : i32, i32
  }
  func.func @transform_3(%arg0: i32) -> (i32, i32) {
    %c0_i32 = arith.constant 0 : i32
    %c0_i32_0 = arith.constant 0 : i32
    return %arg0, %c0_i32 : i32, i32
  }
}

</mosaic_0001>

<bundles_post_ra>
// kernel: tpu_custom_call.1
= control target key start
LH: loop header
LB: loop body
LE: loop exit
PB: predicated region body
PF: predicated region fallthrough
CT: control target
= control target key end

     0   :  { %8 = vsyncpa [#allocation3], 0  ;;  %s308_s0 = inlined_call_operand.hbm [shape: f32[16,32], index: 0, kind: input, shape index: {}]   ;;  %s309_s1 = inlined_call_operand.hbm [shape: bf16[32,128], index: 1, kind: input, shape index: {}]   ;;  %s310_s2 = inlined_call_operand.vmem [shape: f32[1,128], index: 2, kind: input, shape index: {}]   ;;  %s311_s3 = inlined_call_operand.hbm [shape: f32[16,128], index: 3, kind: output, shape index: {}]  }
   0x1   :  { %9 = vsyncpa [#allocation6], 0 }
   0x2   :  { %10 = vsyncpa [#allocation4], 0  ;;  %s261_s12 = smov [#allocation2]  }
   0x3   :  { %s16_s13 = sshll.u32 %s261_s12, 4  ;;  %s17_s13 = int_to_ptr.vmem [resolvable:$true] %s16_s13 }
   0x4   :  { %s203_s14 = scalar_lea.vmem %s17_s13, 256  ;;  %p208_p1 = scmp.lt.s32.totalorder %s17_s13, %s17_s13 }
   0x5   :  { %p204_p0 = scmp.ne.s32.totalorder %s17_s13, %s203_s14  ;;  %p209_p2 = scmp.lt.s32.totalorder %s203_s14, %s203_s14 }
   0x7   :  { %p210_p3 = por %p209_p2, %p208_p1 }
   0x9   :  { %p211_p4 = pnand %p210_p3, %p204_p0 }
   0xb   :  { %214 = shalt.err (!%p211_p4)
}
   0xc   :  { %s262_s15 = smov 128   ;;  %s263_s16 = smov 8  }
   0xd   :  { %22 = dma.hbm_to_vmem [thread:$0]  %s308_s0, 256, %s17_s13, [#allocation3], %s262_s15, %s262_s15, %s263_s16  }
   0xe   :  { %s264_s19 = smov [#allocation5]  }
   0xf   :  { %s28_s20 = sshll.u32 %s264_s19, 4  ;;  %s29_s20 = int_to_ptr.vmem [resolvable:$true] %s28_s20 }
  0x10   :  { %s223_s21 = scalar_lea.vmem %s29_s20, 256  ;;  %p228_p6 = scmp.lt.s32.totalorder %s29_s20, %s29_s20 }
  0x11   :  { %p224_p5 = scmp.ne.s32.totalorder %s29_s20, %s223_s21  ;;  %p229_p7 = scmp.lt.s32.totalorder %s223_s21, %s223_s21 }
  0x13   :  { %p230_p8 = por %p229_p7, %p228_p6 }
  0x15   :  { %p231_p9 = pnand %p230_p8, %p224_p5 }
  0x17   :  { %234 = shalt.err (!%p231_p9)
}
  0x18   :  { %s265_s22 = smov 64   ;;  %s266_s23 = smov 4  }
  0x19   :  { %34 = dma.hbm_to_vmem [thread:$0]  %s309_s1, 256, %s29_s20, [#allocation6], %s265_s22, %s265_s22, %s266_s23  }
  0x1a   :  { %255 = dma.done.wait [#allocation3], 256  }
  0x1b   :  { %256 = vsyncadd [#allocation3], 4294967040 }
  0x1c   :  { %257 = dma.done.wait [#allocation6], 256  }
  0x1d   :  { %258 = vsyncadd [#allocation6], 4294967040  ;;  %v267_v0 = vmov 0.0   ;;  %vm268_vm0 = vmmov 0   ;;  %v185_v1 = vld [vmem:[#allocation5 + $0x8] sm:$0xff]   ;;  %v186_v2 = vld [vmem:[#allocation5] sm:$0xff]  }
  0x1e   :  { %168 = vmatprep.subr.bf16.mxu0 %v267_v0  ;;  %172 = vmatprep.mubr.msk.bf16.mxu0 %vm268_vm0, %v267_v0  ;;  %v44_v3 = vld [vmem:[#allocation2] sm:$0xff]  ;;  %v45_v4 = vld [vmem:[#allocation2 + $0x8] sm:$0xff]  ;;  %vm70_vm1 = vcmask 261120  }
  0x1f   :  { %169 = vmatpush3.bf16.msra.mxu0 %v185_v1  ;;  %v46_v5 = vpack.c.bf16 %v45_v4, %v44_v3  ;;  %v161_v6 = vld [vmem:[%s310_s2] ss:$0 sm:$0xff]  ;;  %s269_s2 = smov [#allocation7]  }
  0x20   :  { %170 = vmatprep.subr.bf16.mxu0 %v267_v0  ;;  %s148_s26 = sshll.u32 %s269_s2, 4  ;;  %s149_s26 = int_to_ptr.vmem [resolvable:$true] %s148_s26 }
  0x21   :  { %s235_s27 = scalar_lea.vmem %s149_s26, 256  ;;  %p240_p11 = scmp.lt.s32.totalorder %s149_s26, %s149_s26 }
  0x22   :  { %p236_p10 = scmp.ne.s32.totalorder %s149_s26, %s235_s27  ;;  %p241_p12 = scmp.lt.s32.totalorder %s235_s27, %s235_s27 }
  0x23   :  { %171 = vmatpush3.bf16.msra.mxu0 %v186_v2 }
  0x24   :  { %p242_p13 = por %p241_p12, %p240_p11 }
  0x26   :  { %173 = vmatmul.mubr.msk.bf16.vlgmr.msra.gmra.mxu0 %vm70_vm1, %v46_v5  ;;  %p243_p0 = pnand %p242_p13, %p236_p10 }
  0xe6   :  { %v108_v7 = vpop.f32.mrf.mxu0 }
  0xe7   :  { %v109_v8 = vadd.f32 %v161_v6, %v108_v7 }
  0xe8   :  { %v174_v9 = vpop.f32.mrf.mxu0 }
  0xe9   :  { %v115_v10 = vmul.f32 %v109_v8, %v109_v8 }
  0xea   :  { %v111_v11 = vpop.f32.mrf.mxu0 }
  0xeb   :  { %v112_v12 = vadd.f32 %v161_v6, %v111_v11  ;;  %117 = vadd.xlane.f32.xlu0 %v115_v10 }
  0xec   :  { %v175_v13 = vpop.f32.mrf.mxu0 }
  0xed   :  { %v116_v14 = vmul.f32 %v112_v12, %v112_v12 }
  0xef   :  { %119 = vadd.xlane.f32.xlu0 %v116_v14 }
 0x174   :  { %v118_v15 = vpop.xlane.xlu0 %117 }
 0x175   :  { %187 = vrsqrt.f32 %v118_v15  ;;  %vm123_vm2 = vcmp.eq.f32.partialorder %v118_v15, inf  ;;  %v126_v19 = vand.u32 2147483648, %v118_v15  ;;  %vm125_vm3 = vcmp.eq.f32.partialorder %v118_v15, 0.0 }
 0x178   :  { %v120_v16 = vpop.xlane.xlu0 %119 }
 0x179   :  { %189 = vrsqrt.f32 %v120_v16  ;;  %vm130_vm4 = vcmp.eq.f32.partialorder %v120_v16, inf  ;;  %v133_v25 = vand.u32 2147483648, %v120_v16  ;;  %vm132_vm5 = vcmp.eq.f32.partialorder %v120_v16, 0.0 }
 0x182   :  { %v188_v17 = vpop.eup %187 }
 0x183   :  { %v122_v18 = vmul.f32 %v188_v17, %v118_v15 }
 0x185   :  { %v124_v20 = vsel %vm123_vm2, %v118_v15, %v122_v18 }
 0x186   :  { %v190_v21 = vpop.eup %189  ;;  %v127_v22 = vsel %vm125_vm3, %v126_v19, %v124_v20 }
 0x187   :  { %v135_v23 = vadd.f32 1e-08, %v127_v22  ;;  %v129_v24 = vmul.f32 %v190_v21, %v120_v16 }
 0x189   :  { %191 = vrcp.f32 %v135_v23  ;;  %v131_v26 = vsel %vm130_vm4, %v120_v16, %v129_v24 }
 0x18a   :  { %v134_v27 = vsel %vm132_vm5, %v133_v25, %v131_v26 }
 0x18b   :  { %v136_v28 = vadd.f32 1e-08, %v134_v27 }
 0x18d   :  { %193 = vrcp.f32 %v136_v28 }
 0x196   :  { %v192_v29 = vpop.eup %191 }
 0x197   :  { %v138_v30 = vmul.f32 %v192_v29, %v109_v8 }
 0x199   :  { %141 = vst [vmem:[#allocation7] sm:$0xff] %v138_v30 }
 0x19a   :  { %v194_v31 = vpop.eup %193 }
 0x19b   :  { %v140_v32 = vmul.f32 %v194_v31, %v112_v12 }
 0x19d   :  { %142 = vst [vmem:[#allocation7 + $0x8] sm:$0xff] %v140_v32 }
 0x19e   :  { %246 = shalt.err (!%p243_p0)
}
 0x19f   :  { %154 = dma.vmem_to_hbm [thread:$0]  %s149_s26, 256, %s311_s3, [#allocation4], %s262_s15, %s262_s15, %s263_s16  }
 0x1a0   :  { %259 = dma.done.wait [#allocation4], 256  }
 0x1a1   :  { %260 = vsyncadd [#allocation4], 4294967040 }
 0x1a2   :  { %158 = vsyncpa [#allocation3], 1 }
 0x1a3   :  { %159 = vsyncpa [#allocation6], 1 }
 0x1a4   :  { %160 = vsyncpa [#allocation4], 1 }

</bundles_post_ra>
